<compile_context>
chip_gen: v7x
topology: tpu7x:2x2x1
jax: 0.10.0
libtpu: 0.0.40
codegen_flags: <defaults>
</compile_context>

<pallas_src>
import functools

import jax
import jax.numpy as jnp
from jax.experimental import pallas as pl
from jax.experimental.pallas import tpu as pltpu


_LANE = 128     # vreg lane width (last dim)
_SUBLANE = 8    # vreg sublane count (second-to-last dim)


def _round_up(x, m):
    return ((x + m - 1) // m) * m


def _residual_fn_linear_kernel(x_ref, w_ref, b_ref, o_ref, *, compute_dtype):
    # fn(x) = x @ W + b on the MXU: x cast on the VPU right before the matmul
    # (so the wrapper never does a separate HBM cast pass), f32 accumulate,
    # bias added in f32, single cast to the output dtype.
    xs = x_ref[...].astype(compute_dtype)
    y = jnp.dot(xs, w_ref[...], preferred_element_type=jnp.float32)
    o_ref[...] = (y + b_ref[...]).astype(o_ref.dtype)


def _choose_tile_m(M, Dp, x_itemsize, target_bytes=2 << 20):
    """Row tile so each x tile is ~2 MiB (>=85% of HBM roofline), 8-aligned."""
    tm = max(256, _round_up(max(1, target_bytes // (Dp * x_itemsize)), 256))
    # On large problems keep >= ~8 grid steps so the 'parallel' axis can feed
    # both v7x TensorCores and each core still pipelines DMA against compute.
    if M >= 8 * 256:
        tm = min(tm, max(256, _round_up(pl.cdiv(M, 8), 256)))
    # Never exceed the (sublane-aligned) problem size.
    return min(tm, _round_up(M, _SUBLANE))


def residual_forward(x, w, b, *, compute_dtype=jnp.bfloat16, out_dtype=None):
    """Residual.forward: returns fn(x) (this variant has NO skip connection).

    x: (B, N, D)   w: (D, D) input-major (y = x @ w + b, i.e. torch weight.T)
    b: (D,)
    """
    B, N, D = x.shape
    M = B * N
    out_dtype = x.dtype if out_dtype is None else out_dtype

    # ---- lane-dense last dim: pad D only when actually needed ---------------
    Dp = _round_up(D, _LANE)
    x2d = x.reshape(M, D)
    if Dp != D:
        x2d = jnp.pad(x2d, ((0, 0), (0, Dp - D)))
        w = jnp.pad(w, ((0, Dp - D), (0, Dp - D)))
        b = jnp.pad(b, (0, Dp - D))
    wp = w.astype(compute_dtype)                 # resident in VMEM, cast once
    b2d = b.reshape(1, Dp).astype(jnp.float32)   # bias stays f32

    xbytes = jnp.dtype(x2d.dtype).itemsize
    wbytes = jnp.dtype(compute_dtype).itemsize
    obytes = jnp.dtype(out_dtype).itemsize

    tm = _choose_tile_m(M, Dp, xbytes)
    grid_m = pl.cdiv(M, tm)   # ragged last block: reads padded, stores masked

    cost = pl.CostEstimate(
        flops=2 * M * Dp * Dp,
        bytes_accessed=M * Dp * (xbytes + obytes) + Dp * Dp * wbytes + Dp * 4,
        transcendentals=0,
    )

    # VMEM: double-buffered x/out tiles + resident W (budgeted at 2 copies so the
    # clamp is safe even if single-buffering is unavailable) + bias row.
    vmem_need = (2 * tm * Dp * xbytes
                 + 2 * tm * Dp * obytes
                 + 2 * Dp * Dp * wbytes
                 + 2 * _SUBLANE * Dp * 4)
    vmem_limit = int(min(max(2 * vmem_need, 16 << 20), 48 << 20))
    # TODO(synk): for very large D (>= ~3k in bf16) W no longer fits resident; add
    # an (m, n, k) grid (k last, "arbitrary") with a pl.when-guarded f32 VMEM
    # accumulator so only (tk, tn) slabs of W live in VMEM.

    kernel = functools.partial(_residual_fn_linear_kernel,
                               compute_dtype=compute_dtype)

    def call(resident_pipeline_mode):
        extra = ({} if resident_pipeline_mode is None
                 else {"pipeline_mode": resident_pipeline_mode})
        return pl.pallas_call(
            kernel,
            out_shape=jax.ShapeDtypeStruct((M, Dp), out_dtype),
            grid_spec=pltpu.PrefetchScalarGridSpec(
                num_scalar_prefetch=0,
                grid=(grid_m,),
                in_specs=[
                    pl.BlockSpec((tm, Dp), lambda i: (i, 0)),            # x: row-tiled
                    pl.BlockSpec((Dp, Dp), lambda i: (0, 0), **extra),   # W: resident
                    pl.BlockSpec((1, Dp), lambda i: (0, 0), **extra),    # bias: resident
                ],
                out_specs=pl.BlockSpec((tm, Dp), lambda i: (i, 0)),
            ),
            compiler_params=pltpu.CompilerParams(
                dimension_semantics=("parallel",),   # megacore-shard rows on v7x
                vmem_limit_bytes=vmem_limit,
            ),
            cost_estimate=cost,
        )(x2d, wp, b2d)

    try:
        # Constant index_maps -> single-buffer W/bias, reclaiming VMEM for tiles.
        out = call(pl.Buffered(1))
    except Exception:   # fallback if this JAX build doesn't plumb per-spec buffering
        out = call(None)

    if Dp != D:
        out = out[:, :D]
    # Faithful to the PyTorch source: Residual returns fn(x) only (no `+ x`).
    return out.reshape(B, N, D)


if __name__ == "__main__":
    # Small shapes consistent with the module's usage (tokens x hidden Linear).
    B, N, D = 2, 256, 32     # M = 512 rows
    key = jax.random.PRNGKey(0)
    kx, kw, kb = jax.random.split(key, 3)

    x = jax.random.normal(kx, (B, N, D), dtype=jnp.float32)
    # Deterministic "fn" parameters (synthetic Linear(D, D)).
    w = jax.random.normal(kw, (D, D), dtype=jnp.float32) * 0.02
    b = jax.random.normal(kb, (D,), dtype=jnp.float32) * 0.02

    y = residual_forward(x, w, b)
    jax.block_until_ready(y)

    # Sanity check against plain-JAX f32 reference of the same fn.
    # bf16 MXU operands -> loosened tolerance.
    y_ref = x.reshape(B * N, D) @ w + b
    assert jnp.allclose(y.reshape(B * N, D), y_ref, atol=2e-2, rtol=2e-2), (
        float(jnp.max(jnp.abs(y.reshape(B * N, D) - y_ref))))

    print("KERNEL_OK")
</pallas_src>

<mosaic_0001>
module attributes {stable_mosaic.version = 11 : i64} {
  func.func @_residual_fn_linear_kernel(%arg0: i32, %arg1: memref<512x128xf32, #tpu.memory_space<vmem>>, %arg2: memref<128x128xbf16, #tpu.memory_space<vmem>>, %arg3: memref<1x128xf32, #tpu.memory_space<vmem>>, %arg4: memref<512x128xf32, #tpu.memory_space<vmem>>) attributes {dimension_semantics = [#tpu.dimension_semantics<parallel>], iteration_bounds = array<i64: 1>, scalar_prefetch = 0 : i64, scratch_operands = 0 : i64, tpu.core_type = #tpu.core_type<tc>, window_params = [{transform_indices = @transform_0, window_bounds = array<i64: 512, 128>}, {pipeline_mode = #tpu.pipeline_mode<synchronous>, transform_indices = @transform_1, window_bounds = array<i64: 128, 128>}, {pipeline_mode = #tpu.pipeline_mode<synchronous>, transform_indices = @transform_2, window_bounds = array<i64: 1, 128>}, {transform_indices = @transform_3, window_bounds = array<i64: 512, 128>}]} {
    %c0 = arith.constant 0 : index
    %c0_0 = arith.constant 0 : index
    %0 = vector.load %arg1[%c0, %c0_0] : memref<512x128xf32, #tpu.memory_space<vmem>>, vector<512x128xf32>
    %1 = arith.truncf %0 : vector<512x128xf32> to vector<512x128xbf16>
    %c0_1 = arith.constant 0 : index
    %c0_2 = arith.constant 0 : index
    %2 = vector.load %arg2[%c0_1, %c0_2] : memref<128x128xbf16, #tpu.memory_space<vmem>>, vector<128x128xbf16>
    %cst = arith.constant dense<0.000000e+00> : vector<512x128xf32>
    %3 = tpu.matmul %1, %2, %cst {dimension_numbers = #tpu.dot_dimension_numbers<[1], [0], [0], [1], [0, 0, 1, 1], [], []>} : vector<512x128xbf16>, vector<128x128xbf16>, vector<512x128xf32> -> vector<512x128xf32>
    %c0_3 = arith.constant 0 : index
    %c0_4 = arith.constant 0 : index
    %4 = vector.load %arg3[%c0_3, %c0_4] : memref<1x128xf32, #tpu.memory_space<vmem>>, vector<1x128xf32>
    %5 = vector.broadcast %4 : vector<1x128xf32> to vector<512x128xf32>
    %6 = arith.addf %3, %5 : vector<512x128xf32>
    %c0_5 = arith.constant 0 : index
    %c0_6 = arith.constant 0 : index
    %7 = vector.load %arg4[%c0_5, %c0_6] : memref<512x128xf32, #tpu.memory_space<vmem>>, vector<512x128xf32>
    tpu.vector_store %arg4[%c0_5, %c0_6], %6 {strides = array<i32>} : memref<512x128xf32, #tpu.memory_space<vmem>>, vector<512x128xf32>,
    return
  }
  func.func @transform_0(%arg0: i32) -> (i32, i32) {
    %c0_i32 = arith.constant 0 : i32
    %c0_i32_0 = arith.constant 0 : i32
    return %arg0, %c0_i32 : i32, i32
  }
  func.func @transform_1(%arg0: i32) -> (i32, i32) {
    %c0_i32 = arith.constant 0 : i32
    %c0_i32_0 = arith.constant 0 : i32
    %c0_i32_1 = arith.constant 0 : i32
    return %c0_i32, %c0_i32_0 : i32, i32
  }
  func.func @transform_2(%arg0: i32) -> (i32, i32) {
    %c0_i32 = arith.constant 0 : i32
    %c0_i32_0 = arith.constant 0 : i32
    %c0_i32_1 = arith.constant 0 : i32
    return %c0_i32, %c0_i32_0 : i32, i32
  }
  func.func @transform_3(%arg0: i32) -> (i32, i32) {
    %c0_i32 = arith.constant 0 : i32
    %c0_i32_0 = arith.constant 0 : i32
    return %arg0, %c0_i32 : i32, i32
  }
}

module attributes {stable_mosaic.version = 11 : i64} {
  func.func @_residual_fn_linear_kernel(%arg0: i32, %arg1: memref<512x128xf32, #tpu.memory_space<vmem>>, %arg2: memref<128x128xbf16, #tpu.memory_space<vmem>>, %arg3: memref<1x128xf32, #tpu.memory_space<vmem>>, %arg4: memref<512x128xf32, #tpu.memory_space<vmem>>) attributes {dimension_semantics = [#tpu.dimension_semantics<parallel>], iteration_bounds = array<i64: 1>, scalar_prefetch = 0 : i64, scratch_operands = 0 : i64, tpu.core_type = #tpu.core_type<tc>, window_params = [{transform_indices = @transform_0, window_bounds = array<i64: 512, 128>}, {pipeline_mode = #tpu.pipeline_mode<synchronous>, transform_indices = @transform_1, window_bounds = array<i64: 128, 128>}, {pipeline_mode = #tpu.pipeline_mode<synchronous>, transform_indices = @transform_2, window_bounds = array<i64: 1, 128>}, {transform_indices = @transform_3, window_bounds = array<i64: 512, 128>}]} {
    %c0 = arith.constant 0 : index
    %c0_0 = arith.constant 0 : index
    %0 = vector.load %arg1[%c0, %c0_0] : memref<512x128xf32, #tpu.memory_space<vmem>>, vector<512x128xf32>
    %1 = arith.truncf %0 : vector<512x128xf32> to vector<512x128xbf16>
    %c0_1 = arith.constant 0 : index
    %c0_2 = arith.constant 0 : index
    %2 = vector.load %arg2[%c0_1, %c0_2] : memref<128x128xbf16, #tpu.memory_space<vmem>>, vector<128x128xbf16>
    %cst = arith.constant dense<0.000000e+00> : vector<512x128xf32>
    %3 = tpu.matmul %1, %2, %cst {dimension_numbers = #tpu.dot_dimension_numbers<[1], [0], [0], [1], [0, 0, 1, 1], [], []>} : vector<512x128xbf16>, vector<128x128xbf16>, vector<512x128xf32> -> vector<512x128xf32>
    %c0_3 = arith.constant 0 : index
    %c0_4 = arith.constant 0 : index
    %4 = vector.load %arg3[%c0_3, %c0_4] : memref<1x128xf32, #tpu.memory_space<vmem>>, vector<1x128xf32>
    %5 = vector.broadcast %4 : vector<1x128xf32> to vector<512x128xf32>
    %6 = arith.addf %3, %5 : vector<512x128xf32>
    %c0_5 = arith.constant 0 : index
    %c0_6 = arith.constant 0 : index
    %7 = vector.load %arg4[%c0_5, %c0_6] : memref<512x128xf32, #tpu.memory_space<vmem>>, vector<512x128xf32>
    tpu.vector_store %arg4[%c0_5, %c0_6], %6 {strides = array<i32>} : memref<512x128xf32, #tpu.memory_space<vmem>>, vector<512x128xf32>,
    return
  }
  func.func @transform_0(%arg0: i32) -> (i32, i32) {
    %c0_i32 = arith.constant 0 : i32
    %c0_i32_0 = arith.constant 0 : i32
    return %arg0, %c0_i32 : i32, i32
  }
  func.func @transform_1(%arg0: i32) -> (i32, i32) {
    %c0_i32 = arith.constant 0 : i32
    %c0_i32_0 = arith.constant 0 : i32
    %c0_i32_1 = arith.constant 0 : i32
    return %c0_i32, %c0_i32_0 : i32, i32
  }
  func.func @transform_2(%arg0: i32) -> (i32, i32) {
    %c0_i32 = arith.constant 0 : i32
    %c0_i32_0 = arith.constant 0 : i32
    %c0_i32_1 = arith.constant 0 : i32
    return %c0_i32, %c0_i32_0 : i32, i32
  }
  func.func @transform_3(%arg0: i32) -> (i32, i32) {
    %c0_i32 = arith.constant 0 : i32
    %c0_i32_0 = arith.constant 0 : i32
    return %arg0, %c0_i32 : i32, i32
  }
}

</mosaic_0001>

<bundles_post_ra>
// kernel: tpu_custom_call.1
= control target key start
LH: loop header
LB: loop body
LE: loop exit
PB: predicated region body
PF: predicated region fallthrough
CT: control target
= control target key end

     0   :  { %8 = vsyncpa [#allocation3], 0  ;;  %s952_s0 = inlined_call_operand.hbm [shape: f32[512,128], index: 0, kind: input, shape index: {}]   ;;  %s953_s1 = inlined_call_operand.hbm [shape: bf16[128,128], index: 1, kind: input, shape index: {}]   ;;  %s954_s2 = inlined_call_operand.vmem [shape: f32[1,128], index: 2, kind: input, shape index: {}]   ;;  %s955_s3 = inlined_call_operand.hbm [shape: f32[512,128], index: 3, kind: output, shape index: {}]  }
   0x1   :  { %9 = vsyncpa [#allocation6], 0 }
   0x2   :  { %10 = vsyncpa [#allocation4], 0  ;;  %s814_s12 = smov [#allocation2]   ;;  %s742_s16 = scalar_lea.hbm %s952_s0, 8192 }
   0x3   :  { %s16_s13 = sshll.u32 %s814_s12, 4  ;;  %p743_p0 = scmp.ne.s32.totalorder %s952_s0, %s742_s16  ;;  %s17_s13 = int_to_ptr.vmem [resolvable:$true] %s16_s13 }
   0x4   :  { %p746_p1 = scmp.lt.u32.totalorder %s742_s16, %s952_s0 }
   0x6   :  { %p748_p2 = pnand %p746_p1, %p743_p0 }
   0x8   :  { %751 = shalt.err (!%p748_p2)
}
   0x9   :  { %s752_s21 = scalar_lea.vmem %s17_s13, 8192  ;;  %p757_p4 = scmp.lt.s32.totalorder %s17_s13, %s17_s13 }
   0xa   :  { %p753_p3 = scmp.ne.s32.totalorder %s17_s13, %s752_s21  ;;  %p758_p5 = scmp.lt.s32.totalorder %s752_s21, %s752_s21 }
   0xc   :  { %p759_p6 = por %p758_p5, %p757_p4 }
   0xe   :  { %p760_p7 = pnand %p759_p6, %p753_p3 }
  0x10   :  { %763 = shalt.err (!%p760_p7)
}
  0x11   :  { %s815_s22 = smov 128   ;;  %s816_s23 = smov 8  }
  0x12   :  { %22 = dma.hbm_to_vmem [thread:$0]  %s952_s0, 8192, %s17_s13, [#allocation3], %s815_s22, %s815_s22, %s816_s23  }
  0x13   :  { %s817_s26 = smov [#allocation5]   ;;  %s764_s30 = scalar_lea.hbm %s953_s1, 1024 }
  0x14   :  { %s28_s27 = sshll.u32 %s817_s26, 4  ;;  %p765_p8 = scmp.ne.s32.totalorder %s953_s1, %s764_s30  ;;  %s29_s27 = int_to_ptr.vmem [resolvable:$true] %s28_s27 }
  0x15   :  { %p768_p9 = scmp.lt.u32.totalorder %s764_s30, %s953_s1 }
  0x17   :  { %p770_p10 = pnand %p768_p9, %p765_p8 }
  0x19   :  { %773 = shalt.err (!%p770_p10)
}
  0x1a   :  { %s774_s8 = scalar_lea.vmem %s29_s27, 1024  ;;  %p779_p12 = scmp.lt.s32.totalorder %s29_s27, %s29_s27 }
  0x1b   :  { %p775_p11 = scmp.ne.s32.totalorder %s29_s27, %s774_s8  ;;  %p780_p13 = scmp.lt.s32.totalorder %s774_s8, %s774_s8 }
  0x1d   :  { %p781_p0 = por %p780_p13, %p779_p12 }
  0x1f   :  { %p782_p1 = pnand %p781_p0, %p775_p11 }
  0x21   :  { %785 = shalt.err (!%p782_p1)
}
  0x22   :  { %s818_s0 = smov 64   ;;  %s819_s9 = smov 4  }
  0x23   :  { %34 = dma.hbm_to_vmem [thread:$0]  %s953_s1, 1024, %s29_s27, [#allocation6], %s818_s0, %s818_s0, %s819_s9  }
  0x24   :  { %808 = dma.done.wait [#allocation3], 8192  }
  0x25   :  { %809 = vsyncadd [#allocation3], 4294959104 }
  0x26   :  { %810 = dma.done.wait [#allocation6], 1024  }
  0x27   :  { %811 = vsyncadd [#allocation6], 4294966272  ;;  %v734_v0 = vld [vmem:[#allocation5] sm:$0xff]   ;;  %v735_v1 = vld [vmem:[#allocation5 + $0x8] sm:$0xff]  }
  0x28   :  { %631 = vmatprep.subr.bf16.mxu0 %v734_v0  ;;  %711 = vmatprep.subr.bf16.mxu1 %v734_v0  ;;  %v736_v2 = vld [vmem:[#allocation5 + $0x10] sm:$0xff]   ;;  %v737_v3 = vld [vmem:[#allocation5 + $0x18] sm:$0xff]   ;;  %v44_v4 = vld [vmem:[#allocation2] sm:$0xff] }
  0x29   :  { %632 = vmatpush3.bf16.msra.mxu0 %v734_v0  ;;  %719 = vmatpush3.bf16.msra.mxu1 %v734_v0  ;;  %v45_v5 = vld [vmem:[#allocation2 + $0x8] sm:$0xff]  ;;  %v76_v6 = vld [vmem:[#allocation2 + $0x100] sm:$0xff]  ;;  %v740_v12 = vld [vmem:[#allocation5 + $0x30] sm:$0xff]  }
  0x2a   :  { %633 = vmatprep.subr.bf16.mxu0 %v735_v1  ;;  %712 = vmatprep.subr.bf16.mxu1 %v735_v1  ;;  %v108_v7 = vpack.c.bf16 %v45_v5, %v44_v4  ;;  %v77_v8 = vld [vmem:[#allocation2 + $0x108] sm:$0xff]  ;;  %v738_v10 = vld [vmem:[#allocation5 + $0x20] sm:$0xff]   ;;  %v741_v13 = vld [vmem:[#allocation5 + $0x38] sm:$0xff]  }
  0x2b   :  { %v124_v9 = vpack.c.bf16 %v77_v8, %v76_v6  ;;  %v739_v11 = vld [vmem:[#allocation5 + $0x28] sm:$0xff]   ;;  %v46_v14 = vld [vmem:[#allocation2 + $0x10] sm:$0xff]  ;;  %v47_v15 = vld [vmem:[#allocation2 + $0x18] sm:$0xff] }
  0x2c   :  { %647 = vmatprep.mubr.bf16.mxu0 %v108_v7  ;;  %v78_v16 = vld [vmem:[#allocation2 + $0x110] sm:$0xff]  ;;  %v79_v17 = vld [vmem:[#allocation2 + $0x118] sm:$0xff]  ;;  %v48_v18 = vld [vmem:[#allocation2 + $0x20] sm:$0xff]  ;;  %v109_v22 = vpack.c.bf16 %v47_v15, %v46_v14 }
  0x2d   :  { %634 = vmatpush3.bf16.msra.mxu0 %v735_v1  ;;  %720 = vmatpush3.bf16.msra.mxu1 %v735_v1  ;;  %v49_v19 = vld [vmem:[#allocation2 + $0x28] sm:$0xff]  ;;  %v80_v20 = vld [vmem:[#allocation2 + $0x120] sm:$0xff]  ;;  %v125_v23 = vpack.c.bf16 %v79_v17, %v78_v16  ;;  %v50_v26 = vld [vmem:[#allocation2 + $0x30] sm:$0xff] }
  0x2e   :  { %635 = vmatprep.subr.bf16.mxu0 %v736_v2  ;;  %713 = vmatprep.subr.bf16.mxu1 %v736_v2  ;;  %v81_v21 = vld [vmem:[#allocation2 + $0x128] sm:$0xff]  ;;  %v110_v24 = vpack.c.bf16 %v49_v19, %v48_v18  ;;  %v51_v27 = vld [vmem:[#allocation2 + $0x38] sm:$0xff]  ;;  %v82_v28 = vld [vmem:[#allocation2 + $0x130] sm:$0xff] }
  0x2f   :  { %679 = vmatprep.mubr.bf16.mxu1 %v124_v9  ;;  %v126_v25 = vpack.c.bf16 %v81_v21, %v80_v20  ;;  %v83_v29 = vld [vmem:[#allocation2 + $0x138] sm:$0xff]  ;;  %v52_v30 = vld [vmem:[#allocation2 + $0x40] sm:$0xff]  ;;  %v53_v31 = vld [vmem:[#allocation2 + $0x48] sm:$0xff]  ;;  %v111_v34 = vpack.c.bf16 %v51_v27, %v50_v26 }
  0x30   :  { %v84_v32 = vld [vmem:[#allocation2 + $0x140] sm:$0xff]  ;;  %v85_v33 = vld [vmem:[#allocation2 + $0x148] sm:$0xff]  ;;  %v127_v35 = vpack.c.bf16 %v83_v29, %v82_v28  ;;  %v112_v36 = vpack.c.bf16 %v53_v31, %v52_v30  ;;  %v54_v38 = vld [vmem:[#allocation2 + $0x50] sm:$0xff] }
  0x31   :  { %636 = vmatpush3.bf16.msra.mxu0 %v736_v2  ;;  %721 = vmatpush3.bf16.msra.mxu1 %v736_v2  ;;  %v128_v37 = vpack.c.bf16 %v85_v33, %v84_v32  ;;  %v55_v39 = vld [vmem:[#allocation2 + $0x58] sm:$0xff]  ;;  %v86_v40 = vld [vmem:[#allocation2 + $0x150] sm:$0xff]  ;;  %v56_v42 = vld [vmem:[#allocation2 + $0x60] sm:$0xff] }
  0x32   :  { %637 = vmatprep.subr.bf16.mxu0 %v737_v3  ;;  %714 = vmatprep.subr.bf16.mxu1 %v737_v3  ;;  %v87_v41 = vld [vmem:[#allocation2 + $0x158] sm:$0xff]  ;;  %v57_v43 = vld [vmem:[#allocation2 + $0x68] sm:$0xff]  ;;  %v88_v44 = vld [vmem:[#allocation2 + $0x160] sm:$0xff]  ;;  %v113_v46 = vpack.c.bf16 %v55_v39, %v54_v38 }
  0x33   :  { %v89_v45 = vld [vmem:[#allocation2 + $0x168] sm:$0xff]  ;;  %v129_v47 = vpack.c.bf16 %v87_v41, %v86_v40  ;;  %v114_v48 = vpack.c.bf16 %v57_v43, %v56_v42  ;;  %v58_v50 = vld [vmem:[#allocation2 + $0x70] sm:$0xff]  ;;  %v59_v51 = vld [vmem:[#allocation2 + $0x78] sm:$0xff] }
  0x34   :  { %v130_v49 = vpack.c.bf16 %v89_v45, %v88_v44  ;;  %v90_v52 = vld [vmem:[#allocation2 + $0x170] sm:$0xff]  ;;  %v91_v53 = vld [vmem:[#allocation2 + $0x178] sm:$0xff]  ;;  %v60_v54 = vld [vmem:[#allocation2 + $0x80] sm:$0xff]  ;;  %v115_v58 = vpack.c.bf16 %v59_v51, %v58_v50 }
  0x35   :  { %638 = vmatpush3.bf16.msra.mxu0 %v737_v3  ;;  %722 = vmatpush3.bf16.msra.mxu1 %v737_v3  ;;  %v61_v55 = vld [vmem:[#allocation2 + $0x88] sm:$0xff]  ;;  %v92_v56 = vld [vmem:[#allocation2 + $0x180] sm:$0xff]  ;;  %v131_v59 = vpack.c.bf16 %v91_v53, %v90_v52  ;;  %v62_v62 = vld [vmem:[#allocation2 + $0x90] sm:$0xff] }
  0x36   :  { %639 = vmatprep.subr.bf16.mxu0 %v738_v10  ;;  %715 = vmatprep.subr.bf16.mxu1 %v738_v10  ;;  %v93_v57 = vld [vmem:[#allocation2 + $0x188] sm:$0xff]  ;;  %v116_v60 = vpack.c.bf16 %v61_v55, %v60_v54  ;;  %v63_v63 = vld [vmem:[#allocation2 + $0x98] sm:$0xff]  ;;  %v94_v0 = vld [vmem:[#allocation2 + $0x190] sm:$0xff] }
  0x37   :  { %v132_v61 = vpack.c.bf16 %v93_v57, %v92_v56  ;;  %v95_v1 = vld [vmem:[#allocation2 + $0x198] sm:$0xff]  ;;  %v64_v2 = vld [vmem:[#allocation2 + $0xa0] sm:$0xff]  ;;  %v65_v3 = vld [vmem:[#allocation2 + $0xa8] sm:$0xff]  ;;  %v117_v6 = vpack.c.bf16 %v63_v63, %v62_v62 }
  0x38   :  { %v96_v4 = vld [vmem:[#allocation2 + $0x1a0] sm:$0xff]  ;;  %v97_v5 = vld [vmem:[#allocation2 + $0x1a8] sm:$0xff]  ;;  %v133_v7 = vpack.c.bf16 %v95_v1, %v94_v0  ;;  %v118_v8 = vpack.c.bf16 %v65_v3, %v64_v2 }
  0x39   :  { %640 = vmatpush3.bf16.msra.mxu0 %v738_v10  ;;  %723 = vmatpush3.bf16.msra.mxu1 %v738_v10  ;;  %v134_v9 = vpack.c.bf16 %v97_v5, %v96_v4  ;;  %v66_v10 = vld [vmem:[#allocation2 + $0xb0] sm:$0xff]  ;;  %v68_v14 = vld [vmem:[#allocation2 + $0xc0] sm:$0xff]  ;;  %v69_v15 = vld [vmem:[#allocation2 + $0xc8] sm:$0xff] }
  0x3a   :  { %641 = vmatprep.subr.bf16.mxu0 %v739_v11  ;;  %716 = vmatprep.subr.bf16.mxu1 %v739_v11  ;;  %v100_v16 = vld [vmem:[#allocation2 + $0x1c0] sm:$0xff]  ;;  %v101_v17 = vld [vmem:[#allocation2 + $0x1c8] sm:$0xff]  ;;  %v120_v20 = vpack.c.bf16 %v69_v15, %v68_v14 }
  0x3b   :  { %v136_v21 = vpack.c.bf16 %v101_v17, %v100_v16  ;;  %v72_v26 = vld [vmem:[#allocation2 + $0xe0] sm:$0xff]  ;;  %v73_v27 = vld [vmem:[#allocation2 + $0xe8] sm:$0xff] }
  0x3c   :  { %v104_v28 = vld [vmem:[#allocation2 + $0x1e0] sm:$0xff]  ;;  %v105_v29 = vld [vmem:[#allocation2 + $0x1e8] sm:$0xff]  ;;  %v122_v32 = vpack.c.bf16 %v73_v27, %v72_v26 }
  0x3d   :  { %642 = vmatpush3.bf16.msra.mxu0 %v739_v11  ;;  %724 = vmatpush3.bf16.msra.mxu1 %v739_v11  ;;  %v67_v11 = vld [vmem:[#allocation2 + $0xb8] sm:$0xff]  ;;  %v138_v33 = vpack.c.bf16 %v105_v29, %v104_v28  ;;  %v871_v40 = vld [vmem:[%s954_s2] ss:$0 sm:$0xff]  ;;  %s820_s2 = smov [#allocation7]  }
  0x3e   :  { %643 = vmatprep.subr.bf16.mxu0 %v740_v12  ;;  %717 = vmatprep.subr.bf16.mxu1 %v740_v12  ;;  %v119_v18 = vpack.c.bf16 %v67_v11, %v66_v10  ;;  %s569_s13 = sshll.u32 %s820_s2, 4  ;;  %s570_s13 = int_to_ptr.vmem [resolvable:$true] %s569_s13 }
  0x3f   :  { %s786_s14 = scalar_lea.vmem %s570_s13, 8192  ;;  %p791_p3 = scmp.lt.s32.totalorder %s570_s13, %s570_s13 }
  0x40   :  { %p787_p2 = scmp.ne.s32.totalorder %s570_s13, %s786_s14  ;;  %p792_p4 = scmp.lt.s32.totalorder %s786_s14, %s786_s14 }
  0x41   :  { %644 = vmatpush3.bf16.msra.mxu0 %v740_v12  ;;  %725 = vmatpush3.bf16.msra.mxu1 %v740_v12  ;;  %v98_v12 = vld [vmem:[#allocation2 + $0x1b0] sm:$0xff] }
  0x42   :  { %645 = vmatprep.subr.bf16.mxu0 %v741_v13  ;;  %718 = vmatprep.subr.bf16.mxu1 %v741_v13  ;;  %p793_p5 = por %p792_p4, %p791_p3 }
  0x44   :  { %p794_p6 = pnand %p793_p5, %p787_p2 }
  0x45   :  { %646 = vmatpush3.bf16.msra.mxu0 %v741_v13  ;;  %726 = vmatpush3.bf16.msra.mxu1 %v741_v13  ;;  %v99_v13 = vld [vmem:[#allocation2 + $0x1b8] sm:$0xff] }
  0x46   :  { %v135_v19 = vpack.c.bf16 %v99_v13, %v98_v12 }
  0x48   :  { %648 = vmatmul.mubr.bf16.vlgmr.msra.gmra.mrb[0].mxu0 %v109_v22  ;;  %680 = vmatmul.mubr.bf16.vlgmr.msra.gmra.mrb[0].mxu1 %v125_v23  ;;  %v70_v22 = vld [vmem:[#allocation2 + $0xd0] sm:$0xff]  ;;  %v71_v23 = vld [vmem:[#allocation2 + $0xd8] sm:$0xff] }
  0x49   :  { %651 = vmatprep.mubr.bf16.mxu0 %v110_v24  ;;  %683 = vmatprep.mubr.bf16.mxu1 %v126_v25  ;;  %v102_v24 = vld [vmem:[#allocation2 + $0x1d0] sm:$0xff]  ;;  %v103_v25 = vld [vmem:[#allocation2 + $0x1d8] sm:$0xff]  ;;  %v121_v30 = vpack.c.bf16 %v71_v23, %v70_v22 }
  0x4a   :  { %v137_v31 = vpack.c.bf16 %v103_v25, %v102_v24 }
  0x50   :  { %652 = vmatmul.mubr.bf16.gmra.mrb[4].mxu0 %v111_v34  ;;  %684 = vmatmul.mubr.bf16.gmra.mrb[4].mxu1 %v127_v35  ;;  %v74_v34 = vld [vmem:[#allocation2 + $0xf0] sm:$0xff]  ;;  %v75_v35 = vld [vmem:[#allocation2 + $0xf8] sm:$0xff] }
  0x51   :  { %655 = vmatprep.mubr.bf16.mxu0 %v112_v36  ;;  %687 = vmatprep.mubr.bf16.mxu1 %v128_v37  ;;  %v106_v36 = vld [vmem:[#allocation2 + $0x1f0] sm:$0xff]  ;;  %v107_v37 = vld [vmem:[#allocation2 + $0x1f8] sm:$0xff]  ;;  %v123_v38 = vpack.c.bf16 %v75_v35, %v74_v34 }
  0x52   :  { %v139_v39 = vpack.c.bf16 %v107_v37, %v106_v36 }
  0x58   :  { %656 = vmatmul.mubr.bf16.gmra.mrb[8].mxu0 %v113_v46  ;;  %688 = vmatmul.mubr.bf16.gmra.mrb[8].mxu1 %v129_v47 }
  0x59   :  { %659 = vmatprep.mubr.bf16.mxu0 %v114_v48  ;;  %691 = vmatprep.mubr.bf16.mxu1 %v130_v49 }
  0x60   :  { %660 = vmatmul.mubr.bf16.gmra.mrb[12].mxu0 %v115_v58  ;;  %692 = vmatmul.mubr.bf16.gmra.mrb[12].mxu1 %v131_v59 }
  0x61   :  { %663 = vmatprep.mubr.bf16.mxu0 %v116_v60  ;;  %695 = vmatprep.mubr.bf16.mxu1 %v132_v61 }
  0x68   :  { %664 = vmatmul.mubr.bf16.gmra.mrb[16].mxu0 %v117_v6  ;;  %696 = vmatmul.mubr.bf16.gmra.mrb[16].mxu1 %v133_v7 }
  0x69   :  { %667 = vmatprep.mubr.bf16.mxu0 %v118_v8  ;;  %699 = vmatprep.mubr.bf16.mxu1 %v134_v9 }
  0x70   :  { %668 = vmatmul.mubr.bf16.gmra.mrb[20].mxu0 %v119_v18  ;;  %700 = vmatmul.mubr.bf16.gmra.mrb[20].mxu1 %v135_v19 }
  0x71   :  { %671 = vmatprep.mubr.bf16.mxu0 %v120_v20  ;;  %703 = vmatprep.mubr.bf16.mxu1 %v136_v21 }
  0x78   :  { %672 = vmatmul.mubr.bf16.gmra.mrb[24].mxu0 %v121_v30  ;;  %704 = vmatmul.mubr.bf16.gmra.mrb[24].mxu1 %v137_v31 }
  0x79   :  { %675 = vmatprep.mubr.bf16.mxu0 %v122_v32  ;;  %707 = vmatprep.mubr.bf16.mxu1 %v138_v33 }
  0x80   :  { %676 = vmatmul.mubr.bf16.gmra.mrb[28].mxu0 %v123_v38  ;;  %708 = vmatmul.mubr.bf16.gmra.mrb[28].mxu1 %v139_v39 }
 0x11b   :  { %v649_v41 = vpop.f32.mrb[0].mxu0  ;;  %v681_v42 = vpop.f32.mrb[0].mxu1 }
 0x11c   :  { %v254_v43 = vadd.f32 %v649_v41, %v871_v40  ;;  %v382_v44 = vadd.f32 %v681_v42, %v871_v40  ;;  %v245_v45 = vpop.f32.mrb[1].mxu0  ;;  %v373_v46 = vpop.f32.mrb[1].mxu1 }
 0x11d   :  { %v246_v47 = vadd.f32 %v871_v40, %v245_v45  ;;  %v374_v48 = vadd.f32 %v871_v40, %v373_v46  ;;  %v650_v49 = vpop.f32.mrb[2].mxu0  ;;  %v682_v50 = vpop.f32.mrb[2].mxu1 }
 0x11e   :  { %502 = vst [vmem:[#allocation7 + $0x10] sm:$0xff] %v254_v43  ;;  %534 = vst [vmem:[#allocation7 + $0x110] sm:$0xff] %v382_v44  ;;  %v257_v51 = vadd.f32 %v650_v49, %v871_v40  ;;  %v385_v52 = vadd.f32 %v682_v50, %v871_v40  ;;  %v248_v53 = vpop.f32.mrb[3].mxu0  ;;  %v376_v54 = vpop.f32.mrb[3].mxu1 }
 0x11f   :  { %500 = vst [vmem:[#allocation7] sm:$0xff] %v246_v47  ;;  %532 = vst [vmem:[#allocation7 + $0x100] sm:$0xff] %v374_v48  ;;  %v249_v55 = vadd.f32 %v871_v40, %v248_v53  ;;  %v377_v56 = vadd.f32 %v871_v40, %v376_v54 }
 0x120   :  { %503 = vst [vmem:[#allocation7 + $0x18] sm:$0xff] %v257_v51  ;;  %535 = vst [vmem:[#allocation7 + $0x118] sm:$0xff] %v385_v52 }
 0x121   :  { %501 = vst [vmem:[#allocation7 + $0x8] sm:$0xff] %v249_v55  ;;  %533 = vst [vmem:[#allocation7 + $0x108] sm:$0xff] %v377_v56 }
 0x123   :  { %v653_v57 = vpop.f32.mrb[4].mxu0  ;;  %v685_v58 = vpop.f32.mrb[4].mxu1 }
 0x124   :  { %v270_v59 = vadd.f32 %v653_v57, %v871_v40  ;;  %v398_v60 = vadd.f32 %v685_v58, %v871_v40  ;;  %v261_v61 = vpop.f32.mrb[5].mxu0  ;;  %v389_v62 = vpop.f32.mrb[5].mxu1 }
 0x125   :  { %v262_v63 = vadd.f32 %v871_v40, %v261_v61  ;;  %v390_v0 = vadd.f32 %v871_v40, %v389_v62  ;;  %v654_v1 = vpop.f32.mrb[6].mxu0  ;;  %v686_v2 = vpop.f32.mrb[6].mxu1 }
 0x126   :  { %506 = vst [vmem:[#allocation7 + $0x30] sm:$0xff] %v270_v59  ;;  %538 = vst [vmem:[#allocation7 + $0x130] sm:$0xff] %v398_v60  ;;  %v273_v3 = vadd.f32 %v654_v1, %v871_v40  ;;  %v401_v4 = vadd.f32 %v686_v2, %v871_v40  ;;  %v264_v5 = vpop.f32.mrb[7].mxu0  ;;  %v392_v6 = vpop.f32.mrb[7].mxu1 }
 0x127   :  { %504 = vst [vmem:[#allocation7 + $0x20] sm:$0xff] %v262_v63  ;;  %536 = vst [vmem:[#allocation7 + $0x120] sm:$0xff] %v390_v0  ;;  %v265_v7 = vadd.f32 %v871_v40, %v264_v5  ;;  %v393_v8 = vadd.f32 %v871_v40, %v392_v6 }
 0x128   :  { %507 = vst [vmem:[#allocation7 + $0x38] sm:$0xff] %v273_v3  ;;  %539 = vst [vmem:[#allocation7 + $0x138] sm:$0xff] %v401_v4 }
 0x129   :  { %505 = vst [vmem:[#allocation7 + $0x28] sm:$0xff] %v265_v7  ;;  %537 = vst [vmem:[#allocation7 + $0x128] sm:$0xff] %v393_v8 }
 0x12b   :  { %v657_v9 = vpop.f32.mrb[8].mxu0  ;;  %v689_v10 = vpop.f32.mrb[8].mxu1 }
 0x12c   :  { %v286_v11 = vadd.f32 %v657_v9, %v871_v40  ;;  %v414_v12 = vadd.f32 %v689_v10, %v871_v40  ;;  %v277_v13 = vpop.f32.mrb[9].mxu0  ;;  %v405_v14 = vpop.f32.mrb[9].mxu1 }
 0x12d   :  { %v278_v15 = vadd.f32 %v871_v40, %v277_v13  ;;  %v406_v16 = vadd.f32 %v871_v40, %v405_v14  ;;  %v658_v17 = vpop.f32.mrb[10].mxu0  ;;  %v690_v18 = vpop.f32.mrb[10].mxu1 }
 0x12e   :  { %510 = vst [vmem:[#allocation7 + $0x50] sm:$0xff] %v286_v11  ;;  %542 = vst [vmem:[#allocation7 + $0x150] sm:$0xff] %v414_v12  ;;  %v289_v19 = vadd.f32 %v658_v17, %v871_v40  ;;  %v417_v20 = vadd.f32 %v690_v18, %v871_v40  ;;  %v280_v21 = vpop.f32.mrb[11].mxu0  ;;  %v408_v22 = vpop.f32.mrb[11].mxu1 }
 0x12f   :  { %508 = vst [vmem:[#allocation7 + $0x40] sm:$0xff] %v278_v15  ;;  %540 = vst [vmem:[#allocation7 + $0x140] sm:$0xff] %v406_v16  ;;  %v281_v23 = vadd.f32 %v871_v40, %v280_v21  ;;  %v409_v24 = vadd.f32 %v871_v40, %v408_v22 }
 0x130   :  { %511 = vst [vmem:[#allocation7 + $0x58] sm:$0xff] %v289_v19  ;;  %543 = vst [vmem:[#allocation7 + $0x158] sm:$0xff] %v417_v20 }
 0x131   :  { %509 = vst [vmem:[#allocation7 + $0x48] sm:$0xff] %v281_v23  ;;  %541 = vst [vmem:[#allocation7 + $0x148] sm:$0xff] %v409_v24 }
 0x133   :  { %v661_v25 = vpop.f32.mrb[12].mxu0  ;;  %v693_v26 = vpop.f32.mrb[12].mxu1 }
 0x134   :  { %v302_v27 = vadd.f32 %v661_v25, %v871_v40  ;;  %v430_v28 = vadd.f32 %v693_v26, %v871_v40  ;;  %v293_v29 = vpop.f32.mrb[13].mxu0  ;;  %v421_v30 = vpop.f32.mrb[13].mxu1 }
 0x135   :  { %v294_v31 = vadd.f32 %v871_v40, %v293_v29  ;;  %v422_v32 = vadd.f32 %v871_v40, %v421_v30  ;;  %v662_v33 = vpop.f32.mrb[14].mxu0  ;;  %v694_v34 = vpop.f32.mrb[14].mxu1 }
 0x136   :  { %514 = vst [vmem:[#allocation7 + $0x70] sm:$0xff] %v302_v27  ;;  %546 = vst [vmem:[#allocation7 + $0x170] sm:$0xff] %v430_v28  ;;  %v305_v35 = vadd.f32 %v662_v33, %v871_v40  ;;  %v433_v36 = vadd.f32 %v694_v34, %v871_v40  ;;  %v296_v37 = vpop.f32.mrb[15].mxu0  ;;  %v424_v38 = vpop.f32.mrb[15].mxu1 }
 0x137   :  { %512 = vst [vmem:[#allocation7 + $0x60] sm:$0xff] %v294_v31  ;;  %544 = vst [vmem:[#allocation7 + $0x160] sm:$0xff] %v422_v32  ;;  %v297_v39 = vadd.f32 %v871_v40, %v296_v37  ;;  %v425_v41 = vadd.f32 %v871_v40, %v424_v38 }
 0x138   :  { %515 = vst [vmem:[#allocation7 + $0x78] sm:$0xff] %v305_v35  ;;  %547 = vst [vmem:[#allocation7 + $0x178] sm:$0xff] %v433_v36 }
 0x139   :  { %513 = vst [vmem:[#allocation7 + $0x68] sm:$0xff] %v297_v39  ;;  %545 = vst [vmem:[#allocation7 + $0x168] sm:$0xff] %v425_v41 }
 0x13b   :  { %v665_v42 = vpop.f32.mrb[16].mxu0  ;;  %v697_v43 = vpop.f32.mrb[16].mxu1 }
 0x13c   :  { %v318_v44 = vadd.f32 %v665_v42, %v871_v40  ;;  %v446_v45 = vadd.f32 %v697_v43, %v871_v40  ;;  %v309_v46 = vpop.f32.mrb[17].mxu0  ;;  %v437_v47 = vpop.f32.mrb[17].mxu1 }
 0x13d   :  { %v310_v48 = vadd.f32 %v871_v40, %v309_v46  ;;  %v438_v49 = vadd.f32 %v871_v40, %v437_v47  ;;  %v666_v50 = vpop.f32.mrb[18].mxu0  ;;  %v698_v51 = vpop.f32.mrb[18].mxu1 }
 0x13e   :  { %518 = vst [vmem:[#allocation7 + $0x90] sm:$0xff] %v318_v44  ;;  %550 = vst [vmem:[#allocation7 + $0x190] sm:$0xff] %v446_v45  ;;  %v321_v52 = vadd.f32 %v666_v50, %v871_v40  ;;  %v449_v53 = vadd.f32 %v698_v51, %v871_v40  ;;  %v312_v54 = vpop.f32.mrb[19].mxu0  ;;  %v440_v55 = vpop.f32.mrb[19].mxu1 }
 0x13f   :  { %516 = vst [vmem:[#allocation7 + $0x80] sm:$0xff] %v310_v48  ;;  %548 = vst [vmem:[#allocation7 + $0x180] sm:$0xff] %v438_v49  ;;  %v313_v56 = vadd.f32 %v871_v40, %v312_v54  ;;  %v441_v57 = vadd.f32 %v871_v40, %v440_v55 }
 0x140   :  { %519 = vst [vmem:[#allocation7 + $0x98] sm:$0xff] %v321_v52  ;;  %551 = vst [vmem:[#allocation7 + $0x198] sm:$0xff] %v449_v53 }
 0x141   :  { %517 = vst [vmem:[#allocation7 + $0x88] sm:$0xff] %v313_v56  ;;  %549 = vst [vmem:[#allocation7 + $0x188] sm:$0xff] %v441_v57 }
 0x143   :  { %v669_v58 = vpop.f32.mrb[20].mxu0  ;;  %v701_v59 = vpop.f32.mrb[20].mxu1 }
 0x144   :  { %v334_v60 = vadd.f32 %v669_v58, %v871_v40  ;;  %v462_v61 = vadd.f32 %v701_v59, %v871_v40  ;;  %v325_v62 = vpop.f32.mrb[21].mxu0  ;;  %v453_v63 = vpop.f32.mrb[21].mxu1 }
 0x145   :  { %v326_v0 = vadd.f32 %v871_v40, %v325_v62  ;;  %v454_v1 = vadd.f32 %v871_v40, %v453_v63  ;;  %v670_v2 = vpop.f32.mrb[22].mxu0  ;;  %v702_v3 = vpop.f32.mrb[22].mxu1 }
 0x146   :  { %522 = vst [vmem:[#allocation7 + $0xb0] sm:$0xff] %v334_v60  ;;  %554 = vst [vmem:[#allocation7 + $0x1b0] sm:$0xff] %v462_v61  ;;  %v337_v4 = vadd.f32 %v670_v2, %v871_v40  ;;  %v465_v5 = vadd.f32 %v702_v3, %v871_v40  ;;  %v328_v6 = vpop.f32.mrb[23].mxu0  ;;  %v456_v7 = vpop.f32.mrb[23].mxu1 }
 0x147   :  { %520 = vst [vmem:[#allocation7 + $0xa0] sm:$0xff] %v326_v0  ;;  %552 = vst [vmem:[#allocation7 + $0x1a0] sm:$0xff] %v454_v1  ;;  %v329_v8 = vadd.f32 %v871_v40, %v328_v6  ;;  %v457_v9 = vadd.f32 %v871_v40, %v456_v7 }
 0x148   :  { %523 = vst [vmem:[#allocation7 + $0xb8] sm:$0xff] %v337_v4  ;;  %555 = vst [vmem:[#allocation7 + $0x1b8] sm:$0xff] %v465_v5 }
 0x149   :  { %521 = vst [vmem:[#allocation7 + $0xa8] sm:$0xff] %v329_v8  ;;  %553 = vst [vmem:[#allocation7 + $0x1a8] sm:$0xff] %v457_v9 }
 0x14b   :  { %v673_v10 = vpop.f32.mrb[24].mxu0  ;;  %v705_v11 = vpop.f32.mrb[24].mxu1 }
 0x14c   :  { %v350_v12 = vadd.f32 %v673_v10, %v871_v40  ;;  %v478_v13 = vadd.f32 %v705_v11, %v871_v40  ;;  %v341_v14 = vpop.f32.mrb[25].mxu0  ;;  %v469_v15 = vpop.f32.mrb[25].mxu1 }
 0x14d   :  { %v342_v16 = vadd.f32 %v871_v40, %v341_v14  ;;  %v470_v17 = vadd.f32 %v871_v40, %v469_v15  ;;  %v674_v18 = vpop.f32.mrb[26].mxu0  ;;  %v706_v19 = vpop.f32.mrb[26].mxu1 }
 0x14e   :  { %526 = vst [vmem:[#allocation7 + $0xd0] sm:$0xff] %v350_v12  ;;  %558 = vst [vmem:[#allocation7 + $0x1d0] sm:$0xff] %v478_v13  ;;  %v353_v20 = vadd.f32 %v674_v18, %v871_v40  ;;  %v481_v21 = vadd.f32 %v706_v19, %v871_v40  ;;  %v344_v22 = vpop.f32.mrb[27].mxu0  ;;  %v472_v23 = vpop.f32.mrb[27].mxu1 }
 0x14f   :  { %524 = vst [vmem:[#allocation7 + $0xc0] sm:$0xff] %v342_v16  ;;  %556 = vst [vmem:[#allocation7 + $0x1c0] sm:$0xff] %v470_v17  ;;  %v345_v24 = vadd.f32 %v871_v40, %v344_v22  ;;  %v473_v25 = vadd.f32 %v871_v40, %v472_v23 }
 0x150   :  { %527 = vst [vmem:[#allocation7 + $0xd8] sm:$0xff] %v353_v20  ;;  %559 = vst [vmem:[#allocation7 + $0x1d8] sm:$0xff] %v481_v21 }
 0x151   :  { %525 = vst [vmem:[#allocation7 + $0xc8] sm:$0xff] %v345_v24  ;;  %557 = vst [vmem:[#allocation7 + $0x1c8] sm:$0xff] %v473_v25 }
 0x153   :  { %v677_v26 = vpop.f32.mrb[28].mxu0  ;;  %v709_v27 = vpop.f32.mrb[28].mxu1 }
 0x154   :  { %v366_v28 = vadd.f32 %v677_v26, %v871_v40  ;;  %v494_v29 = vadd.f32 %v709_v27, %v871_v40  ;;  %v357_v30 = vpop.f32.mrb[29].mxu0  ;;  %v485_v31 = vpop.f32.mrb[29].mxu1 }
 0x155   :  { %v358_v32 = vadd.f32 %v871_v40, %v357_v30  ;;  %v486_v33 = vadd.f32 %v871_v40, %v485_v31  ;;  %v678_v34 = vpop.f32.mrb[30].mxu0  ;;  %v710_v35 = vpop.f32.mrb[30].mxu1 }
 0x156   :  { %530 = vst [vmem:[#allocation7 + $0xf0] sm:$0xff] %v366_v28  ;;  %562 = vst [vmem:[#allocation7 + $0x1f0] sm:$0xff] %v494_v29  ;;  %v369_v36 = vadd.f32 %v678_v34, %v871_v40  ;;  %v497_v37 = vadd.f32 %v710_v35, %v871_v40  ;;  %v360_v38 = vpop.f32.mrb[31].mxu0  ;;  %v488_v39 = vpop.f32.mrb[31].mxu1 }
 0x157   :  { %528 = vst [vmem:[#allocation7 + $0xe0] sm:$0xff] %v358_v32  ;;  %560 = vst [vmem:[#allocation7 + $0x1e0] sm:$0xff] %v486_v33  ;;  %v361_v41 = vadd.f32 %v871_v40, %v360_v38  ;;  %v489_v42 = vadd.f32 %v871_v40, %v488_v39 }
 0x158   :  { %531 = vst [vmem:[#allocation7 + $0xf8] sm:$0xff] %v369_v36  ;;  %563 = vst [vmem:[#allocation7 + $0x1f8] sm:$0xff] %v497_v37 }
 0x159   :  { %529 = vst [vmem:[#allocation7 + $0xe8] sm:$0xff] %v361_v41  ;;  %561 = vst [vmem:[#allocation7 + $0x1e8] sm:$0xff] %v489_v42 }
 0x15a   :  { %797 = shalt.err (!%p794_p6)
}
 0x15b   :  { %s798_s17 = scalar_lea.hbm %s955_s3, 8192 }
 0x15c   :  { %p799_p7 = scmp.ne.s32.totalorder %s955_s3, %s798_s17  ;;  %p802_p8 = scmp.lt.u32.totalorder %s798_s17, %s955_s3 }
 0x15e   :  { %p804_p9 = pnand %p802_p8, %p799_p7 }
 0x160   :  { %807 = shalt.err (!%p804_p9)
}
 0x161   :  { %575 = dma.vmem_to_hbm [thread:$0]  %s570_s13, 8192, %s955_s3, [#allocation4], %s815_s22, %s815_s22, %s816_s23  }
 0x162   :  { %812 = dma.done.wait [#allocation4], 8192  }
 0x163   :  { %813 = vsyncadd [#allocation4], 4294959104 }
 0x164   :  { %579 = vsyncpa [#allocation3], 1 }
 0x165   :  { %580 = vsyncpa [#allocation6], 1 }
 0x166   :  { %581 = vsyncpa [#allocation4], 1 }

// kernel: tpu_custom_call.1
= control target key start
LH: loop header
LB: loop body
LE: loop exit
PB: predicated region body
PF: predicated region fallthrough
CT: control target
= control target key end

     0   :  { %8 = vsyncpa [#allocation3], 0  ;;  %s952_s0 = inlined_call_operand.hbm [shape: f32[512,128], index: 0, kind: input, shape index: {}]   ;;  %s953_s1 = inlined_call_operand.hbm [shape: bf16[128,128], index: 1, kind: input, shape index: {}]   ;;  %s954_s2 = inlined_call_operand.vmem [shape: f32[1,128], index: 2, kind: input, shape index: {}]   ;;  %s955_s3 = inlined_call_operand.hbm [shape: f32[512,128], index: 3, kind: output, shape index: {}]  }
   0x1   :  { %9 = vsyncpa [#allocation6], 0 }
   0x2   :  { %10 = vsyncpa [#allocation4], 0  ;;  %s814_s12 = smov [#allocation2]   ;;  %s742_s16 = scalar_lea.hbm %s952_s0, 8192 }
   0x3   :  { %s16_s13 = sshll.u32 %s814_s12, 4  ;;  %p743_p0 = scmp.ne.s32.totalorder %s952_s0, %s742_s16  ;;  %s17_s13 = int_to_ptr.vmem [resolvable:$true] %s16_s13 }
   0x4   :  { %p746_p1 = scmp.lt.u32.totalorder %s742_s16, %s952_s0 }
   0x6   :  { %p748_p2 = pnand %p746_p1, %p743_p0 }
   0x8   :  { %751 = shalt.err (!%p748_p2)
}
   0x9   :  { %s752_s21 = scalar_lea.vmem %s17_s13, 8192  ;;  %p757_p4 = scmp.lt.s32.totalorder %s17_s13, %s17_s13 }
   0xa   :  { %p753_p3 = scmp.ne.s32.totalorder %s17_s13, %s752_s21  ;;  %p758_p5 = scmp.lt.s32.totalorder %s752_s21, %s752_s21 }
   0xc   :  { %p759_p6 = por %p758_p5, %p757_p4 }
   0xe   :  { %p760_p7 = pnand %p759_p6, %p753_p3 }
  0x10   :  { %763 = shalt.err (!%p760_p7)
}
  0x11   :  { %s815_s22 = smov 128   ;;  %s816_s23 = smov 8  }
  0x12   :  { %22 = dma.hbm_to_vmem [thread:$0]  %s952_s0, 8192, %s17_s13, [#allocation3], %s815_s22, %s815_s22, %s816_s23  }
  0x13   :  { %s817_s26 = smov [#allocation5]   ;;  %s764_s30 = scalar_lea.hbm %s953_s1, 1024 }
  0x14   :  { %s28_s27 = sshll.u32 %s817_s26, 4  ;;  %p765_p8 = scmp.ne.s32.totalorder %s953_s1, %s764_s30  ;;  %s29_s27 = int_to_ptr.vmem [resolvable:$true] %s28_s27 }
  0x15   :  { %p768_p9 = scmp.lt.u32.totalorder %s764_s30, %s953_s1 }
  0x17   :  { %p770_p10 = pnand %p768_p9, %p765_p8 }
  0x19   :  { %773 = shalt.err (!%p770_p10)
}
  0x1a   :  { %s774_s8 = scalar_lea.vmem %s29_s27, 1024  ;;  %p779_p12 = scmp.lt.s32.totalorder %s29_s27, %s29_s27 }
  0x1b   :  { %p775_p11 = scmp.ne.s32.totalorder %s29_s27, %s774_s8  ;;  %p780_p13 = scmp.lt.s32.totalorder %s774_s8, %s774_s8 }
  0x1d   :  { %p781_p0 = por %p780_p13, %p779_p12 }
  0x1f   :  { %p782_p1 = pnand %p781_p0, %p775_p11 }
  0x21   :  { %785 = shalt.err (!%p782_p1)
}
  0x22   :  { %s818_s0 = smov 64   ;;  %s819_s9 = smov 4  }
  0x23   :  { %34 = dma.hbm_to_vmem [thread:$0]  %s953_s1, 1024, %s29_s27, [#allocation6], %s818_s0, %s818_s0, %s819_s9  }
  0x24   :  { %808 = dma.done.wait [#allocation3], 8192  }
  0x25   :  { %809 = vsyncadd [#allocation3], 4294959104 }
  0x26   :  { %810 = dma.done.wait [#allocation6], 1024  }
  0x27   :  { %811 = vsyncadd [#allocation6], 4294966272  ;;  %v734_v0 = vld [vmem:[#allocation5] sm:$0xff]   ;;  %v735_v1 = vld [vmem:[#allocation5 + $0x8] sm:$0xff]  }
  0x28   :  { %631 = vmatprep.subr.bf16.mxu0 %v734_v0  ;;  %711 = vmatprep.subr.bf16.mxu1 %v734_v0  ;;  %v736_v2 = vld [vmem:[#allocation5 + $0x10] sm:$0xff]   ;;  %v737_v3 = vld [vmem:[#allocation5 + $0x18] sm:$0xff]   ;;  %v44_v4 = vld [vmem:[#allocation2] sm:$0xff] }
  0x29   :  { %632 = vmatpush3.bf16.msra.mxu0 %v734_v0  ;;  %719 = vmatpush3.bf16.msra.mxu1 %v734_v0  ;;  %v45_v5 = vld [vmem:[#allocation2 + $0x8] sm:$0xff]  ;;  %v76_v6 = vld [vmem:[#allocation2 + $0x100] sm:$0xff]  ;;  %v740_v12 = vld [vmem:[#allocation5 + $0x30] sm:$0xff]  }
  0x2a   :  { %633 = vmatprep.subr.bf16.mxu0 %v735_v1  ;;  %712 = vmatprep.subr.bf16.mxu1 %v735_v1  ;;  %v108_v7 = vpack.c.bf16 %v45_v5, %v44_v4  ;;  %v77_v8 = vld [vmem:[#allocation2 + $0x108] sm:$0xff]  ;;  %v738_v10 = vld [vmem:[#allocation5 + $0x20] sm:$0xff]   ;;  %v741_v13 = vld [vmem:[#allocation5 + $0x38] sm:$0xff]  }
  0x2b   :  { %v124_v9 = vpack.c.bf16 %v77_v8, %v76_v6  ;;  %v739_v11 = vld [vmem:[#allocation5 + $0x28] sm:$0xff]   ;;  %v46_v14 = vld [vmem:[#allocation2 + $0x10] sm:$0xff]  ;;  %v47_v15 = vld [vmem:[#allocation2 + $0x18] sm:$0xff] }
  0x2c   :  { %647 = vmatprep.mubr.bf16.mxu0 %v108_v7  ;;  %v78_v16 = vld [vmem:[#allocation2 + $0x110] sm:$0xff]  ;;  %v79_v17 = vld [vmem:[#allocation2 + $0x118] sm:$0xff]  ;;  %v48_v18 = vld [vmem:[#allocation2 + $0x20] sm:$0xff]  ;;  %v109_v22 = vpack.c.bf16 %v47_v15, %v46_v14 }
  0x2d   :  { %634 = vmatpush3.bf16.msra.mxu0 %v735_v1  ;;  %720 = vmatpush3.bf16.msra.mxu1 %v735_v1  ;;  %v49_v19 = vld [vmem:[#allocation2 + $0x28] sm:$0xff]  ;;  %v80_v20 = vld [vmem:[#allocation2 + $0x120] sm:$0xff]  ;;  %v125_v23 = vpack.c.bf16 %v79_v17, %v78_v16  ;;  %v50_v26 = vld [vmem:[#allocation2 + $0x30] sm:$0xff] }
  0x2e   :  { %635 = vmatprep.subr.bf16.mxu0 %v736_v2  ;;  %713 = vmatprep.subr.bf16.mxu1 %v736_v2  ;;  %v81_v21 = vld [vmem:[#allocation2 + $0x128] sm:$0xff]  ;;  %v110_v24 = vpack.c.bf16 %v49_v19, %v48_v18  ;;  %v51_v27 = vld [vmem:[#allocation2 + $0x38] sm:$0xff]  ;;  %v82_v28 = vld [vmem:[#allocation2 + $0x130] sm:$0xff] }
  0x2f   :  { %679 = vmatprep.mubr.bf16.mxu1 %v124_v9  ;;  %v126_v25 = vpack.c.bf16 %v81_v21, %v80_v20  ;;  %v83_v29 = vld [vmem:[#allocation2 + $0x138] sm:$0xff]  ;;  %v52_v30 = vld [vmem:[#allocation2 + $0x40] sm:$0xff]  ;;  %v53_v31 = vld [vmem:[#allocation2 + $0x48] sm:$0xff]  ;;  %v111_v34 = vpack.c.bf16 %v51_v27, %v50_v26 }
  0x30   :  { %v84_v32 = vld [vmem:[#allocation2 + $0x140] sm:$0xff]  ;;  %v85_v33 = vld [vmem:[#allocation2 + $0x148] sm:$0xff]  ;;  %v127_v35 = vpack.c.bf16 %v83_v29, %v82_v28  ;;  %v112_v36 = vpack.c.bf16 %v53_v31, %v52_v30  ;;  %v54_v38 = vld [vmem:[#allocation2 + $0x50] sm:$0xff] }
  0x31   :  { %636 = vmatpush3.bf16.msra.mxu0 %v736_v2  ;;  %721 = vmatpush3.bf16.msra.mxu1 %v736_v2  ;;  %v128_v37 = vpack.c.bf16 %v85_v33, %v84_v32  ;;  %v55_v39 = vld [vmem:[#allocation2 + $0x58] sm:$0xff]  ;;  %v86_v40 = vld [vmem:[#allocation2 + $0x150] sm:$0xff]  ;;  %v56_v42 = vld [vmem:[#allocation2 + $0x60] sm:$0xff] }
  0x32   :  { %637 = vmatprep.subr.bf16.mxu0 %v737_v3  ;;  %714 = vmatprep.subr.bf16.mxu1 %v737_v3  ;;  %v87_v41 = vld [vmem:[#allocation2 + $0x158] sm:$0xff]  ;;  %v57_v43 = vld [vmem:[#allocation2 + $0x68] sm:$0xff]  ;;  %v88_v44 = vld [vmem:[#allocation2 + $0x160] sm:$0xff]  ;;  %v113_v46 = vpack.c.bf16 %v55_v39, %v54_v38 }
  0x33   :  { %v89_v45 = vld [vmem:[#allocation2 + $0x168] sm:$0xff]  ;;  %v129_v47 = vpack.c.bf16 %v87_v41, %v86_v40  ;;  %v114_v48 = vpack.c.bf16 %v57_v43, %v56_v42  ;;  %v58_v50 = vld [vmem:[#allocation2 + $0x70] sm:$0xff]  ;;  %v59_v51 = vld [vmem:[#allocation2 + $0x78] sm:$0xff] }
  0x34   :  { %v130_v49 = vpack.c.bf16 %v89_v45, %v88_v44  ;;  %v90_v52 = vld [vmem:[#allocation2 + $0x170] sm:$0xff]  ;;  %v91_v53 = vld [vmem:[#allocation2 + $0x178] sm:$0xff]  ;;  %v60_v54 = vld [vmem:[#allocation2 + $0x80] sm:$0xff]  ;;  %v115_v58 = vpack.c.bf16 %v59_v51, %v58_v50 }
  0x35   :  { %638 = vmatpush3.bf16.msra.mxu0 %v737_v3  ;;  %722 = vmatpush3.bf16.msra.mxu1 %v737_v3  ;;  %v61_v55 = vld [vmem:[#allocation2 + $0x88] sm:$0xff]  ;;  %v92_v56 = vld [vmem:[#allocation2 + $0x180] sm:$0xff]  ;;  %v131_v59 = vpack.c.bf16 %v91_v53, %v90_v52  ;;  %v62_v62 = vld [vmem:[#allocation2 + $0x90] sm:$0xff] }
  0x36   :  { %639 = vmatprep.subr.bf16.mxu0 %v738_v10  ;;  %715 = vmatprep.subr.bf16.mxu1 %v738_v10  ;;  %v93_v57 = vld [vmem:[#allocation2 + $0x188] sm:$0xff]  ;;  %v116_v60 = vpack.c.bf16 %v61_v55, %v60_v54  ;;  %v63_v63 = vld [vmem:[#allocation2 + $0x98] sm:$0xff]  ;;  %v94_v0 = vld [vmem:[#allocation2 + $0x190] sm:$0xff] }
  0x37   :  { %v132_v61 = vpack.c.bf16 %v93_v57, %v92_v56  ;;  %v95_v1 = vld [vmem:[#allocation2 + $0x198] sm:$0xff]  ;;  %v64_v2 = vld [vmem:[#allocation2 + $0xa0] sm:$0xff]  ;;  %v65_v3 = vld [vmem:[#allocation2 + $0xa8] sm:$0xff]  ;;  %v117_v6 = vpack.c.bf16 %v63_v63, %v62_v62 }
  0x38   :  { %v96_v4 = vld [vmem:[#allocation2 + $0x1a0] sm:$0xff]  ;;  %v97_v5 = vld [vmem:[#allocation2 + $0x1a8] sm:$0xff]  ;;  %v133_v7 = vpack.c.bf16 %v95_v1, %v94_v0  ;;  %v118_v8 = vpack.c.bf16 %v65_v3, %v64_v2 }
  0x39   :  { %640 = vmatpush3.bf16.msra.mxu0 %v738_v10  ;;  %723 = vmatpush3.bf16.msra.mxu1 %v738_v10  ;;  %v134_v9 = vpack.c.bf16 %v97_v5, %v96_v4  ;;  %v66_v10 = vld [vmem:[#allocation2 + $0xb0] sm:$0xff]  ;;  %v68_v14 = vld [vmem:[#allocation2 + $0xc0] sm:$0xff]  ;;  %v69_v15 = vld [vmem:[#allocation2 + $0xc8] sm:$0xff] }
  0x3a   :  { %641 = vmatprep.subr.bf16.mxu0 %v739_v11  ;;  %716 = vmatprep.subr.bf16.mxu1 %v739_v11  ;;  %v100_v16 = vld [vmem:[#allocation2 + $0x1c0] sm:$0xff]  ;;  %v101_v17 = vld [vmem:[#allocation2 + $0x1c8] sm:$0xff]  ;;  %v120_v20 = vpack.c.bf16 %v69_v15, %v68_v14 }
  0x3b   :  { %v136_v21 = vpack.c.bf16 %v101_v17, %v100_v16  ;;  %v72_v26 = vld [vmem:[#allocation2 + $0xe0] sm:$0xff]  ;;  %v73_v27 = vld [vmem:[#allocation2 + $0xe8] sm:$0xff] }
  0x3c   :  { %v104_v28 = vld [vmem:[#allocation2 + $0x1e0] sm:$0xff]  ;;  %v105_v29 = vld [vmem:[#allocation2 + $0x1e8] sm:$0xff]  ;;  %v122_v32 = vpack.c.bf16 %v73_v27, %v72_v26 }
  0x3d   :  { %642 = vmatpush3.bf16.msra.mxu0 %v739_v11  ;;  %724 = vmatpush3.bf16.msra.mxu1 %v739_v11  ;;  %v67_v11 = vld [vmem:[#allocation2 + $0xb8] sm:$0xff]  ;;  %v138_v33 = vpack.c.bf16 %v105_v29, %v104_v28  ;;  %v871_v40 = vld [vmem:[%s954_s2] ss:$0 sm:$0xff]  ;;  %s820_s2 = smov [#allocation7]  }
  0x3e   :  { %643 = vmatprep.subr.bf16.mxu0 %v740_v12  ;;  %717 = vmatprep.subr.bf16.mxu1 %v740_v12  ;;  %v119_v18 = vpack.c.bf16 %v67_v11, %v66_v10  ;;  %s569_s13 = sshll.u32 %s820_s2, 4  ;;  %s570_s13 = int_to_ptr.vmem [resolvable:$true] %s569_s13 }
  0x3f   :  { %s786_s14 = scalar_lea.vmem %s570_s13, 8192  ;;  %p791_p3 = scmp.lt.s32.totalorder %s570_s13, %s570_s13 }
  0x40   :  { %p787_p2 = scmp.ne.s32.totalorder %s570_s13, %s786_s14  ;;  %p792_p4 = scmp.lt.s32.totalorder %s786_s14, %s786_s14 }
  0x41   :  { %644 = vmatpush3.bf16.msra.mxu0 %v740_v12  ;;  %725 = vmatpush3.bf16.msra.mxu1 %v740_v12  ;;  %v98_v12 = vld [vmem:[#allocation2 + $0x1b0] sm:$0xff] }
  0x42   :  { %645 = vmatprep.subr.bf16.mxu0 %v741_v13  ;;  %718 = vmatprep.subr.bf16.mxu1 %v741_v13  ;;  %p793_p5 = por %p792_p4, %p791_p3 }
  0x44   :  { %p794_p6 = pnand %p793_p5, %p787_p2 }
  0x45   :  { %646 = vmatpush3.bf16.msra.mxu0 %v741_v13  ;;  %726 = vmatpush3.bf16.msra.mxu1 %v741_v13  ;;  %v99_v13 = vld [vmem:[#allocation2 + $0x1b8] sm:$0xff] }
  0x46   :  { %v135_v19 = vpack.c.bf16 %v99_v13, %v98_v12 }
  0x48   :  { %648 = vmatmul.mubr.bf16.vlgmr.msra.gmra.mrb[0].mxu0 %v109_v22  ;;  %680 = vmatmul.mubr.bf16.vlgmr.msra.gmra.mrb[0].mxu1 %v125_v23  ;;  %v70_v22 = vld [vmem:[#allocation2 + $0xd0] sm:$0xff]  ;;  %v71_v23 = vld [vmem:[#allocation2 + $0xd8] sm:$0xff] }
  0x49   :  { %651 = vmatprep.mubr.bf16.mxu0 %v110_v24  ;;  %683 = vmatprep.mubr.bf16.mxu1 %v126_v25  ;;  %v102_v24 = vld [vmem:[#allocation2 + $0x1d0] sm:$0xff]  ;;  %v103_v25 = vld [vmem:[#allocation2 + $0x1d8] sm:$0xff]  ;;  %v121_v30 = vpack.c.bf16 %v71_v23, %v70_v22 }
  0x4a   :  { %v137_v31 = vpack.c.bf16 %v103_v25, %v102_v24 }
  0x50   :  { %652 = vmatmul.mubr.bf16.gmra.mrb[4].mxu0 %v111_v34  ;;  %684 = vmatmul.mubr.bf16.gmra.mrb[4].mxu1 %v127_v35  ;;  %v74_v34 = vld [vmem:[#allocation2 + $0xf0] sm:$0xff]  ;;  %v75_v35 = vld [vmem:[#allocation2 + $0xf8] sm:$0xff] }
  0x51   :  { %655 = vmatprep.mubr.bf16.mxu0 %v112_v36  ;;  %687 = vmatprep.mubr.bf16.mxu1 %v128_v37  ;;  %v106_v36 = vld [vmem:[#allocation2 + $0x1f0] sm:$0xff]  ;;  %v107_v37 = vld [vmem:[#allocation2 + $0x1f8] sm:$0xff]  ;;  %v123_v38 = vpack.c.bf16 %v75_v35, %v74_v34 }
  0x52   :  { %v139_v39 = vpack.c.bf16 %v107_v37, %v106_v36 }
  0x58   :  { %656 = vmatmul.mubr.bf16.gmra.mrb[8].mxu0 %v113_v46  ;;  %688 = vmatmul.mubr.bf16.gmra.mrb[8].mxu1 %v129_v47 }
  0x59   :  { %659 = vmatprep.mubr.bf16.mxu0 %v114_v48  ;;  %691 = vmatprep.mubr.bf16.mxu1 %v130_v49 }
  0x60   :  { %660 = vmatmul.mubr.bf16.gmra.mrb[12].mxu0 %v115_v58  ;;  %692 = vmatmul.mubr.bf16.gmra.mrb[12].mxu1 %v131_v59 }
  0x61   :  { %663 = vmatprep.mubr.bf16.mxu0 %v116_v60  ;;  %695 = vmatprep.mubr.bf16.mxu1 %v132_v61 }
  0x68   :  { %664 = vmatmul.mubr.bf16.gmra.mrb[16].mxu0 %v117_v6  ;;  %696 = vmatmul.mubr.bf16.gmra.mrb[16].mxu1 %v133_v7 }
  0x69   :  { %667 = vmatprep.mubr.bf16.mxu0 %v118_v8  ;;  %699 = vmatprep.mubr.bf16.mxu1 %v134_v9 }
  0x70   :  { %668 = vmatmul.mubr.bf16.gmra.mrb[20].mxu0 %v119_v18  ;;  %700 = vmatmul.mubr.bf16.gmra.mrb[20].mxu1 %v135_v19 }
  0x71   :  { %671 = vmatprep.mubr.bf16.mxu0 %v120_v20  ;;  %703 = vmatprep.mubr.bf16.mxu1 %v136_v21 }
  0x78   :  { %672 = vmatmul.mubr.bf16.gmra.mrb[24].mxu0 %v121_v30  ;;  %704 = vmatmul.mubr.bf16.gmra.mrb[24].mxu1 %v137_v31 }
  0x79   :  { %675 = vmatprep.mubr.bf16.mxu0 %v122_v32  ;;  %707 = vmatprep.mubr.bf16.mxu1 %v138_v33 }
  0x80   :  { %676 = vmatmul.mubr.bf16.gmra.mrb[28].mxu0 %v123_v38  ;;  %708 = vmatmul.mubr.bf16.gmra.mrb[28].mxu1 %v139_v39 }
 0x11b   :  { %v649_v41 = vpop.f32.mrb[0].mxu0  ;;  %v681_v42 = vpop.f32.mrb[0].mxu1 }
 0x11c   :  { %v254_v43 = vadd.f32 %v649_v41, %v871_v40  ;;  %v382_v44 = vadd.f32 %v681_v42, %v871_v40  ;;  %v245_v45 = vpop.f32.mrb[1].mxu0  ;;  %v373_v46 = vpop.f32.mrb[1].mxu1 }
 0x11d   :  { %v246_v47 = vadd.f32 %v871_v40, %v245_v45  ;;  %v374_v48 = vadd.f32 %v871_v40, %v373_v46  ;;  %v650_v49 = vpop.f32.mrb[2].mxu0  ;;  %v682_v50 = vpop.f32.mrb[2].mxu1 }
 0x11e   :  { %502 = vst [vmem:[#allocation7 + $0x10] sm:$0xff] %v254_v43  ;;  %534 = vst [vmem:[#allocation7 + $0x110] sm:$0xff] %v382_v44  ;;  %v257_v51 = vadd.f32 %v650_v49, %v871_v40  ;;  %v385_v52 = vadd.f32 %v682_v50, %v871_v40  ;;  %v248_v53 = vpop.f32.mrb[3].mxu0  ;;  %v376_v54 = vpop.f32.mrb[3].mxu1 }
 0x11f   :  { %500 = vst [vmem:[#allocation7] sm:$0xff] %v246_v47  ;;  %532 = vst [vmem:[#allocation7 + $0x100] sm:$0xff] %v374_v48  ;;  %v249_v55 = vadd.f32 %v871_v40, %v248_v53  ;;  %v377_v56 = vadd.f32 %v871_v40, %v376_v54 }
 0x120   :  { %503 = vst [vmem:[#allocation7 + $0x18] sm:$0xff] %v257_v51  ;;  %535 = vst [vmem:[#allocation7 + $0x118] sm:$0xff] %v385_v52 }
 0x121   :  { %501 = vst [vmem:[#allocation7 + $0x8] sm:$0xff] %v249_v55  ;;  %533 = vst [vmem:[#allocation7 + $0x108] sm:$0xff] %v377_v56 }
 0x123   :  { %v653_v57 = vpop.f32.mrb[4].mxu0  ;;  %v685_v58 = vpop.f32.mrb[4].mxu1 }
 0x124   :  { %v270_v59 = vadd.f32 %v653_v57, %v871_v40  ;;  %v398_v60 = vadd.f32 %v685_v58, %v871_v40  ;;  %v261_v61 = vpop.f32.mrb[5].mxu0  ;;  %v389_v62 = vpop.f32.mrb[5].mxu1 }
 0x125   :  { %v262_v63 = vadd.f32 %v871_v40, %v261_v61  ;;  %v390_v0 = vadd.f32 %v871_v40, %v389_v62  ;;  %v654_v1 = vpop.f32.mrb[6].mxu0  ;;  %v686_v2 = vpop.f32.mrb[6].mxu1 }
 0x126   :  { %506 = vst [vmem:[#allocation7 + $0x30] sm:$0xff] %v270_v59  ;;  %538 = vst [vmem:[#allocation7 + $0x130] sm:$0xff] %v398_v60  ;;  %v273_v3 = vadd.f32 %v654_v1, %v871_v40  ;;  %v401_v4 = vadd.f32 %v686_v2, %v871_v40  ;;  %v264_v5 = vpop.f32.mrb[7].mxu0  ;;  %v392_v6 = vpop.f32.mrb[7].mxu1 }
 0x127   :  { %504 = vst [vmem:[#allocation7 + $0x20] sm:$0xff] %v262_v63  ;;  %536 = vst [vmem:[#allocation7 + $0x120] sm:$0xff] %v390_v0  ;;  %v265_v7 = vadd.f32 %v871_v40, %v264_v5  ;;  %v393_v8 = vadd.f32 %v871_v40, %v392_v6 }
 0x128   :  { %507 = vst [vmem:[#allocation7 + $0x38] sm:$0xff] %v273_v3  ;;  %539 = vst [vmem:[#allocation7 + $0x138] sm:$0xff] %v401_v4 }
 0x129   :  { %505 = vst [vmem:[#allocation7 + $0x28] sm:$0xff] %v265_v7  ;;  %537 = vst [vmem:[#allocation7 + $0x128] sm:$0xff] %v393_v8 }
 0x12b   :  { %v657_v9 = vpop.f32.mrb[8].mxu0  ;;  %v689_v10 = vpop.f32.mrb[8].mxu1 }
 0x12c   :  { %v286_v11 = vadd.f32 %v657_v9, %v871_v40  ;;  %v414_v12 = vadd.f32 %v689_v10, %v871_v40  ;;  %v277_v13 = vpop.f32.mrb[9].mxu0  ;;  %v405_v14 = vpop.f32.mrb[9].mxu1 }
 0x12d   :  { %v278_v15 = vadd.f32 %v871_v40, %v277_v13  ;;  %v406_v16 = vadd.f32 %v871_v40, %v405_v14  ;;  %v658_v17 = vpop.f32.mrb[10].mxu0  ;;  %v690_v18 = vpop.f32.mrb[10].mxu1 }
 0x12e   :  { %510 = vst [vmem:[#allocation7 + $0x50] sm:$0xff] %v286_v11  ;;  %542 = vst [vmem:[#allocation7 + $0x150] sm:$0xff] %v414_v12  ;;  %v289_v19 = vadd.f32 %v658_v17, %v871_v40  ;;  %v417_v20 = vadd.f32 %v690_v18, %v871_v40  ;;  %v280_v21 = vpop.f32.mrb[11].mxu0  ;;  %v408_v22 = vpop.f32.mrb[11].mxu1 }
 0x12f   :  { %508 = vst [vmem:[#allocation7 + $0x40] sm:$0xff] %v278_v15  ;;  %540 = vst [vmem:[#allocation7 + $0x140] sm:$0xff] %v406_v16  ;;  %v281_v23 = vadd.f32 %v871_v40, %v280_v21  ;;  %v409_v24 = vadd.f32 %v871_v40, %v408_v22 }
 0x130   :  { %511 = vst [vmem:[#allocation7 + $0x58] sm:$0xff] %v289_v19  ;;  %543 = vst [vmem:[#allocation7 + $0x158] sm:$0xff] %v417_v20 }
 0x131   :  { %509 = vst [vmem:[#allocation7 + $0x48] sm:$0xff] %v281_v23  ;;  %541 = vst [vmem:[#allocation7 + $0x148] sm:$0xff] %v409_v24 }
 0x133   :  { %v661_v25 = vpop.f32.mrb[12].mxu0  ;;  %v693_v26 = vpop.f32.mrb[12].mxu1 }
 0x134   :  { %v302_v27 = vadd.f32 %v661_v25, %v871_v40  ;;  %v430_v28 = vadd.f32 %v693_v26, %v871_v40  ;;  %v293_v29 = vpop.f32.mrb[13].mxu0  ;;  %v421_v30 = vpop.f32.mrb[13].mxu1 }
 0x135   :  { %v294_v31 = vadd.f32 %v871_v40, %v293_v29  ;;  %v422_v32 = vadd.f32 %v871_v40, %v421_v30  ;;  %v662_v33 = vpop.f32.mrb[14].mxu0  ;;  %v694_v34 = vpop.f32.mrb[14].mxu1 }
 0x136   :  { %514 = vst [vmem:[#allocation7 + $0x70] sm:$0xff] %v302_v27  ;;  %546 = vst [vmem:[#allocation7 + $0x170] sm:$0xff] %v430_v28  ;;  %v305_v35 = vadd.f32 %v662_v33, %v871_v40  ;;  %v433_v36 = vadd.f32 %v694_v34, %v871_v40  ;;  %v296_v37 = vpop.f32.mrb[15].mxu0  ;;  %v424_v38 = vpop.f32.mrb[15].mxu1 }
 0x137   :  { %512 = vst [vmem:[#allocation7 + $0x60] sm:$0xff] %v294_v31  ;;  %544 = vst [vmem:[#allocation7 + $0x160] sm:$0xff] %v422_v32  ;;  %v297_v39 = vadd.f32 %v871_v40, %v296_v37  ;;  %v425_v41 = vadd.f32 %v871_v40, %v424_v38 }
 0x138   :  { %515 = vst [vmem:[#allocation7 + $0x78] sm:$0xff] %v305_v35  ;;  %547 = vst [vmem:[#allocation7 + $0x178] sm:$0xff] %v433_v36 }
 0x139   :  { %513 = vst [vmem:[#allocation7 + $0x68] sm:$0xff] %v297_v39  ;;  %545 = vst [vmem:[#allocation7 + $0x168] sm:$0xff] %v425_v41 }
 0x13b   :  { %v665_v42 = vpop.f32.mrb[16].mxu0  ;;  %v697_v43 = vpop.f32.mrb[16].mxu1 }
 0x13c   :  { %v318_v44 = vadd.f32 %v665_v42, %v871_v40  ;;  %v446_v45 = vadd.f32 %v697_v43, %v871_v40  ;;  %v309_v46 = vpop.f32.mrb[17].mxu0  ;;  %v437_v47 = vpop.f32.mrb[17].mxu1 }
 0x13d   :  { %v310_v48 = vadd.f32 %v871_v40, %v309_v46  ;;  %v438_v49 = vadd.f32 %v871_v40, %v437_v47  ;;  %v666_v50 = vpop.f32.mrb[18].mxu0  ;;  %v698_v51 = vpop.f32.mrb[18].mxu1 }
 0x13e   :  { %518 = vst [vmem:[#allocation7 + $0x90] sm:$0xff] %v318_v44  ;;  %550 = vst [vmem:[#allocation7 + $0x190] sm:$0xff] %v446_v45  ;;  %v321_v52 = vadd.f32 %v666_v50, %v871_v40  ;;  %v449_v53 = vadd.f32 %v698_v51, %v871_v40  ;;  %v312_v54 = vpop.f32.mrb[19].mxu0  ;;  %v440_v55 = vpop.f32.mrb[19].mxu1 }
 0x13f   :  { %516 = vst [vmem:[#allocation7 + $0x80] sm:$0xff] %v310_v48  ;;  %548 = vst [vmem:[#allocation7 + $0x180] sm:$0xff] %v438_v49  ;;  %v313_v56 = vadd.f32 %v871_v40, %v312_v54  ;;  %v441_v57 = vadd.f32 %v871_v40, %v440_v55 }
 0x140   :  { %519 = vst [vmem:[#allocation7 + $0x98] sm:$0xff] %v321_v52  ;;  %551 = vst [vmem:[#allocation7 + $0x198] sm:$0xff] %v449_v53 }
 0x141   :  { %517 = vst [vmem:[#allocation7 + $0x88] sm:$0xff] %v313_v56  ;;  %549 = vst [vmem:[#allocation7 + $0x188] sm:$0xff] %v441_v57 }
 0x143   :  { %v669_v58 = vpop.f32.mrb[20].mxu0  ;;  %v701_v59 = vpop.f32.mrb[20].mxu1 }
 0x144   :  { %v334_v60 = vadd.f32 %v669_v58, %v871_v40  ;;  %v462_v61 = vadd.f32 %v701_v59, %v871_v40  ;;  %v325_v62 = vpop.f32.mrb[21].mxu0  ;;  %v453_v63 = vpop.f32.mrb[21].mxu1 }
 0x145   :  { %v326_v0 = vadd.f32 %v871_v40, %v325_v62  ;;  %v454_v1 = vadd.f32 %v871_v40, %v453_v63  ;;  %v670_v2 = vpop.f32.mrb[22].mxu0  ;;  %v702_v3 = vpop.f32.mrb[22].mxu1 }
 0x146   :  { %522 = vst [vmem:[#allocation7 + $0xb0] sm:$0xff] %v334_v60  ;;  %554 = vst [vmem:[#allocation7 + $0x1b0] sm:$0xff] %v462_v61  ;;  %v337_v4 = vadd.f32 %v670_v2, %v871_v40  ;;  %v465_v5 = vadd.f32 %v702_v3, %v871_v40  ;;  %v328_v6 = vpop.f32.mrb[23].mxu0  ;;  %v456_v7 = vpop.f32.mrb[23].mxu1 }
 0x147   :  { %520 = vst [vmem:[#allocation7 + $0xa0] sm:$0xff] %v326_v0  ;;  %552 = vst [vmem:[#allocation7 + $0x1a0] sm:$0xff] %v454_v1  ;;  %v329_v8 = vadd.f32 %v871_v40, %v328_v6  ;;  %v457_v9 = vadd.f32 %v871_v40, %v456_v7 }
 0x148   :  { %523 = vst [vmem:[#allocation7 + $0xb8] sm:$0xff] %v337_v4  ;;  %555 = vst [vmem:[#allocation7 + $0x1b8] sm:$0xff] %v465_v5 }
 0x149   :  { %521 = vst [vmem:[#allocation7 + $0xa8] sm:$0xff] %v329_v8  ;;  %553 = vst [vmem:[#allocation7 + $0x1a8] sm:$0xff] %v457_v9 }
 0x14b   :  { %v673_v10 = vpop.f32.mrb[24].mxu0  ;;  %v705_v11 = vpop.f32.mrb[24].mxu1 }
 0x14c   :  { %v350_v12 = vadd.f32 %v673_v10, %v871_v40  ;;  %v478_v13 = vadd.f32 %v705_v11, %v871_v40  ;;  %v341_v14 = vpop.f32.mrb[25].mxu0  ;;  %v469_v15 = vpop.f32.mrb[25].mxu1 }
 0x14d   :  { %v342_v16 = vadd.f32 %v871_v40, %v341_v14  ;;  %v470_v17 = vadd.f32 %v871_v40, %v469_v15  ;;  %v674_v18 = vpop.f32.mrb[26].mxu0  ;;  %v706_v19 = vpop.f32.mrb[26].mxu1 }
 0x14e   :  { %526 = vst [vmem:[#allocation7 + $0xd0] sm:$0xff] %v350_v12  ;;  %558 = vst [vmem:[#allocation7 + $0x1d0] sm:$0xff] %v478_v13  ;;  %v353_v20 = vadd.f32 %v674_v18, %v871_v40  ;;  %v481_v21 = vadd.f32 %v706_v19, %v871_v40  ;;  %v344_v22 = vpop.f32.mrb[27].mxu0  ;;  %v472_v23 = vpop.f32.mrb[27].mxu1 }
 0x14f   :  { %524 = vst [vmem:[#allocation7 + $0xc0] sm:$0xff] %v342_v16  ;;  %556 = vst [vmem:[#allocation7 + $0x1c0] sm:$0xff] %v470_v17  ;;  %v345_v24 = vadd.f32 %v871_v40, %v344_v22  ;;  %v473_v25 = vadd.f32 %v871_v40, %v472_v23 }
 0x150   :  { %527 = vst [vmem:[#allocation7 + $0xd8] sm:$0xff] %v353_v20  ;;  %559 = vst [vmem:[#allocation7 + $0x1d8] sm:$0xff] %v481_v21 }
 0x151   :  { %525 = vst [vmem:[#allocation7 + $0xc8] sm:$0xff] %v345_v24  ;;  %557 = vst [vmem:[#allocation7 + $0x1c8] sm:$0xff] %v473_v25 }
 0x153   :  { %v677_v26 = vpop.f32.mrb[28].mxu0  ;;  %v709_v27 = vpop.f32.mrb[28].mxu1 }
 0x154   :  { %v366_v28 = vadd.f32 %v677_v26, %v871_v40  ;;  %v494_v29 = vadd.f32 %v709_v27, %v871_v40  ;;  %v357_v30 = vpop.f32.mrb[29].mxu0  ;;  %v485_v31 = vpop.f32.mrb[29].mxu1 }
 0x155   :  { %v358_v32 = vadd.f32 %v871_v40, %v357_v30  ;;  %v486_v33 = vadd.f32 %v871_v40, %v485_v31  ;;  %v678_v34 = vpop.f32.mrb[30].mxu0  ;;  %v710_v35 = vpop.f32.mrb[30].mxu1 }
 0x156   :  { %530 = vst [vmem:[#allocation7 + $0xf0] sm:$0xff] %v366_v28  ;;  %562 = vst [vmem:[#allocation7 + $0x1f0] sm:$0xff] %v494_v29  ;;  %v369_v36 = vadd.f32 %v678_v34, %v871_v40  ;;  %v497_v37 = vadd.f32 %v710_v35, %v871_v40  ;;  %v360_v38 = vpop.f32.mrb[31].mxu0  ;;  %v488_v39 = vpop.f32.mrb[31].mxu1 }
 0x157   :  { %528 = vst [vmem:[#allocation7 + $0xe0] sm:$0xff] %v358_v32  ;;  %560 = vst [vmem:[#allocation7 + $0x1e0] sm:$0xff] %v486_v33  ;;  %v361_v41 = vadd.f32 %v871_v40, %v360_v38  ;;  %v489_v42 = vadd.f32 %v871_v40, %v488_v39 }
 0x158   :  { %531 = vst [vmem:[#allocation7 + $0xf8] sm:$0xff] %v369_v36  ;;  %563 = vst [vmem:[#allocation7 + $0x1f8] sm:$0xff] %v497_v37 }
 0x159   :  { %529 = vst [vmem:[#allocation7 + $0xe8] sm:$0xff] %v361_v41  ;;  %561 = vst [vmem:[#allocation7 + $0x1e8] sm:$0xff] %v489_v42 }
 0x15a   :  { %797 = shalt.err (!%p794_p6)
}
 0x15b   :  { %s798_s17 = scalar_lea.hbm %s955_s3, 8192 }
 0x15c   :  { %p799_p7 = scmp.ne.s32.totalorder %s955_s3, %s798_s17  ;;  %p802_p8 = scmp.lt.u32.totalorder %s798_s17, %s955_s3 }
 0x15e   :  { %p804_p9 = pnand %p802_p8, %p799_p7 }
 0x160   :  { %807 = shalt.err (!%p804_p9)
}
 0x161   :  { %575 = dma.vmem_to_hbm [thread:$0]  %s570_s13, 8192, %s955_s3, [#allocation4], %s815_s22, %s815_s22, %s816_s23  }
 0x162   :  { %812 = dma.done.wait [#allocation4], 8192  }
 0x163   :  { %813 = vsyncadd [#allocation4], 4294959104 }
 0x164   :  { %579 = vsyncpa [#allocation3], 1 }
 0x165   :  { %580 = vsyncpa [#allocation6], 1 }
 0x166   :  { %581 = vsyncpa [#allocation4], 1 }

</bundles_post_ra>
